<compile_context>
chip_gen: v6e
topology: v6e:2x2x1
jax: 0.10.0
libtpu: 0.0.40
codegen_flags: <defaults>
</compile_context>

<pallas_src>
import functools

import jax
import jax.numpy as jnp
import numpy as np
from jax import lax
from jax.experimental import pallas as pl
from jax.experimental.pallas import tpu as pltpu

_LANE = 128
_SUB = 8
_MAX_BLOCK_ROWS = 8192   # (8192, 128) f32 block = 4 MiB per input
_CHUNK_ROWS = 256        # inner-loop chunk: 32 f32 vregs per input


def _round_up(x, m):
    return -(-x // m) * m


def _make_stats_kernel(block_rows, valid_rows, compute_corr, need_row_mask):
    """Build a kernel that writes per-block per-lane (8,128) partial stats."""
    nstats = 7 if compute_corr else 2
    chunk = min(_CHUNK_ROWS, block_rows)
    n_chunks = block_rows // chunk
    rem = block_rows - n_chunks * chunk   # ragged tail chunk (multiple of 8)

    # Unroll the short fixed-trip inner loop; pick a divisor so scan never has
    # to deal with a remainder group.
    if n_chunks <= 8:
        unroll = True
    elif n_chunks % 4 == 0:
        unroll = 4
    elif n_chunks % 2 == 0:
        unroll = 2
    else:
        unroll = 1

    def kernel(f_ref, y_ref, m_ref, out_ref):
        if need_row_mask:
            # Rows >= limit inside this block are OOB reads past the array end.
            limit = valid_rows - pl.program_id(0) * block_rows

        def stats(r0, csize, base_rows, accs):
            f = f_ref[pl.ds(r0, csize), :].astype(jnp.float32)
            y = y_ref[pl.ds(r0, csize), :].astype(jnp.float32)
            sel = m_ref[pl.ds(r0, csize), :] != 0
            if need_row_mask:
                # jnp.where / logical_and lower to selects, so OOB garbage
                # (even NaN/Inf) never enters the sums.
                sel = jnp.logical_and(sel, base_rows < limit - r0)
            zero = jnp.float32(0.0)
            if compute_corr:
                fm = jnp.where(sel, f, zero)
                ym = jnp.where(sel, y, zero)
                d = fm - ym
                terms = (sel.astype(jnp.float32), d * d, fm, ym,
                         fm * fm, ym * ym, fm * ym)
            else:
                d = jnp.where(sel, f - y, zero)   # fused select (loss-only path)
                terms = (sel.astype(jnp.float32), d * d)

            def fold(x):
                # (csize, 128) -> (8, 128) partial sums: pure VPU vreg adds.
                return jnp.sum(x.reshape(csize // _SUB, _SUB, _LANE), axis=0)

            return tuple(a + fold(t) for a, t in zip(accs, terms))

        # Hoisted once per grid step: JAX does not CSE broadcast_in_dim, so
        # building the iota inside the loop would re-materialize it per chunk.
        base_main = (lax.broadcasted_iota(jnp.int32, (chunk, _LANE), 0)
                     if need_row_mask else None)

        def loop_body(c, accs):
            r0 = pl.multiple_of(c * chunk, chunk)
            return stats(r0, chunk, base_main, accs)

        init = tuple(jnp.zeros((_SUB, _LANE), jnp.float32) for _ in range(nstats))
        accs = lax.fori_loop(0, n_chunks, loop_body, init, unroll=unroll)
        if rem:
            base_tail = (lax.broadcasted_iota(jnp.int32, (rem, _LANE), 0)
                         if need_row_mask else None)
            accs = stats(n_chunks * chunk, rem, base_tail, accs)
        for k in range(nstats):
            out_ref[0, k] = accs[k]

    return kernel, nstats


@functools.partial(jax.jit, static_argnames=("compute_corr", "max_block_rows"))
def opt_resp_loss(features, y_brain, mask, compute_corr=False,
                  max_block_rows=_MAX_BLOCK_ROWS):
    """JAX/Pallas equivalent of OptRespLoss.forward."""
    total = features.size
    rows = -(-total // _LANE)
    rows_a = max(_round_up(rows, _SUB), _SUB)
    pad = rows_a * _LANE - total

    mbr = max(32, _round_up(max_block_rows, 32))
    block_rows = rows_a if rows_a <= mbr else mbr
    grid = -(-rows_a // block_rows)
    need_row_mask = (rows_a % block_rows) != 0

    # Native bf16 streaming halves f/y HBM traffic; fall back to f32 when the
    # packed sublane tiling (16,128)/(32,128) can't be met by this block shape.
    def stream_dtype(dt):
        if dt == jnp.bfloat16 and block_rows % 16 == 0:
            return jnp.bfloat16
        return jnp.float32
    f_dt = stream_dtype(features.dtype)
    y_dt = stream_dtype(y_brain.dtype)
    m_dt = jnp.int8 if block_rows % 32 == 0 else jnp.float32

    def prep(x, dt):
        x = x.reshape(-1)
        if x.dtype != dt:
            x = x.astype(dt)
        if pad:
            # TODO(synk): unaligned numel forces one padded HBM copy; numel % 1024 == 0 stays zero-copy.
            x = jnp.pad(x, (0, pad))
        return x.reshape(rows_a, _LANE)

    # TODO(synk): stream a bool mask directly (no int8 convert pass) once bool
    # block inputs are guaranteed on all targeted jax/Mosaic versions.
    f2 = prep(features, f_dt)
    y2 = prep(y_brain, y_dt)
    m2 = prep(mask != 0, m_dt)

    kernel, nstats = _make_stats_kernel(block_rows, rows_a, compute_corr,
                                        need_row_mask)

    in_spec = pl.BlockSpec((block_rows, _LANE), lambda i: (i, 0))
    out_spec = pl.BlockSpec((1, nstats, _SUB, _LANE), lambda i: (i, 0, 0, 0))

    # Explicit VMEM budget: double-buffered inputs + headroom (~26 MiB for the
    # default 8192-row f32 blocks) -> fits v5e/v6e (128 MiB) and v7x (64 MiB).
    block_bytes = block_rows * _LANE * (np.dtype(f_dt).itemsize
                                        + np.dtype(y_dt).itemsize
                                        + np.dtype(m_dt).itemsize)
    vmem_limit = int(min(2 * block_bytes + (8 << 20), 100 << 20))

    partials = pl.pallas_call(
        kernel,
        out_shape=jax.ShapeDtypeStruct((grid, nstats, _SUB, _LANE), jnp.float32),
        grid_spec=pltpu.PrefetchScalarGridSpec(
            num_scalar_prefetch=0,
            grid=(grid,),
            in_specs=[in_spec, in_spec, in_spec],
            out_specs=out_spec,
        ),
        compiler_params=pltpu.CompilerParams(
            # TODO(synk): on v7x, sweep pltpu.CORE_PARALLEL here to guarantee the
            # grid splits across both TensorCores.
            dimension_semantics=("parallel",),
            vmem_limit_bytes=vmem_limit,
        ),
    )(f2, y2, m2)

    stats = jnp.sum(partials, axis=(0, 2, 3))      # tiny (grid,nstats,8,128) reduce
    n = stats[0]
    loss = stats[1] / n   # NaN on empty mask, matching torch mean-of-empty

    if compute_corr:
        # Single-pass Pearson in f32 (can cancel if |mean| >> std); a centered
        # two-pass variant would need a second HBM sweep.
        sx, sy, sxx, syy, sxy = stats[2], stats[3], stats[4], stats[5], stats[6]
        num = n * sxy - sx * sy
        den = jnp.sqrt((n * sxx - sx * sx) * (n * syy - sy * sy))
        corr = jnp.where(n > 0, num / den, jnp.float32(0.0))
        return loss, corr
    return loss


if __name__ == "__main__":
    key = jax.random.PRNGKey(0)

    def reference(features, y_brain, mask):
        f = jnp.asarray(features, jnp.float32).reshape(-1)
        y = jnp.asarray(y_brain, jnp.float32).reshape(-1)
        m = jnp.asarray(mask).reshape(-1)
        mf, my = f[m], y[m]
        ref_loss = jnp.mean((mf - my) ** 2)
        mfc = mf - jnp.mean(mf)
        myc = my - jnp.mean(my)
        ref_corr = jnp.sum(mfc * myc) / jnp.sqrt(
            jnp.sum(mfc * mfc) * jnp.sum(myc * myc))
        return ref_loss, ref_corr

    cases = [
        # (shape, dtype, max_block_rows)
        ((2, 4, 16, 16), jnp.float32, _MAX_BLOCK_ROWS),   # module's natural NCHW case, grid=1
        ((2, 4, 16, 16), jnp.bfloat16, _MAX_BLOCK_ROWS),  # native bf16 streaming path
        ((21, 128, 128), jnp.float32, 256),               # multi-block grid, ragged last block, int8 mask
    ]
    for shape, dtype, mbr in cases:
        kf, ky, km, key = jax.random.split(key, 4)
        features = jax.random.normal(kf, shape, dtype=dtype)
        y_brain = jax.random.normal(ky, shape, dtype=dtype)
        mask = jax.random.uniform(km, shape) > 0.5

        loss = opt_resp_loss(features, y_brain, mask, max_block_rows=mbr)
        loss_c, corr = opt_resp_loss(features, y_brain, mask, compute_corr=True,
                                     max_block_rows=mbr)
        jax.block_until_ready((loss, loss_c, corr))

        ref_loss, ref_corr = reference(features, y_brain, mask)
        np.testing.assert_allclose(np.asarray(loss), np.asarray(ref_loss),
                                   rtol=1e-4, atol=1e-6)
        np.testing.assert_allclose(np.asarray(loss_c), np.asarray(ref_loss),
                                   rtol=1e-4, atol=1e-6)
        np.testing.assert_allclose(np.asarray(corr), np.asarray(ref_corr),
                                   rtol=1e-3, atol=1e-4)

    # Empty-mask behaviour: loss is NaN (torch mean of empty), corr is exactly 0.
    kf, ky, key = jax.random.split(key, 3)
    shape = (2, 4, 16, 16)
    features = jax.random.normal(kf, shape, dtype=jnp.float32)
    y_brain = jax.random.normal(ky, shape, dtype=jnp.float32)
    empty_mask = jnp.zeros(shape, dtype=bool)
    loss_e, corr_e = opt_resp_loss(features, y_brain, empty_mask, compute_corr=True)
    jax.block_until_ready((loss_e, corr_e))
    assert bool(jnp.isnan(loss_e)) and float(corr_e) == 0.0

    print("KERNEL_OK")
</pallas_src>

<mosaic_0001>
module attributes {stable_mosaic.version = 11 : i64} {
  func.func @kernel(%arg0: i32, %arg1: memref<16x128xf32, #tpu.memory_space<vmem>>, %arg2: memref<16x128xf32, #tpu.memory_space<vmem>>, %arg3: memref<16x128xf32, #tpu.memory_space<vmem>>, %arg4: memref<1x2x8x128xf32, #tpu.memory_space<vmem>>) attributes {dimension_semantics = [#tpu.dimension_semantics<parallel>], iteration_bounds = array<i64: 1>, scalar_prefetch = 0 : i64, scratch_operands = 0 : i64, tpu.core_type = #tpu.core_type<tc>, window_params = [{transform_indices = @transform_0, window_bounds = array<i64: 16, 128>}, {transform_indices = @transform_1, window_bounds = array<i64: 16, 128>}, {transform_indices = @transform_2, window_bounds = array<i64: 16, 128>}, {transform_indices = @transform_3, window_bounds = array<i64: 1, 2, 8, 128>}]} {
    %cst = arith.constant 0.000000e+00 : f32
    %0 = vector.broadcast %cst : f32 to vector<8x128xf32>
    %cst_0 = arith.constant 0.000000e+00 : f32
    %1 = vector.broadcast %cst_0 : f32 to vector<8x128xf32>
    %c0_i32 = arith.constant 0 : i32
    %c16_i32 = arith.constant 16 : i32
    %2 = arith.muli %c0_i32, %c16_i32 : i32
    %3 = tpu.assume_multiple %2, 16 : i32
    %4 = arith.index_cast %3 : i32 to index
    %c0 = arith.constant 0 : index
    %5 = vector.load %arg1[%4, %c0] : memref<16x128xf32, #tpu.memory_space<vmem>>, vector<16x128xf32>
    %6 = arith.index_cast %3 : i32 to index
    %c0_1 = arith.constant 0 : index
    %7 = vector.load %arg2[%6, %c0_1] : memref<16x128xf32, #tpu.memory_space<vmem>>, vector<16x128xf32>
    %8 = arith.index_cast %3 : i32 to index
    %c0_2 = arith.constant 0 : index
    %9 = vector.load %arg3[%8, %c0_2] : memref<16x128xf32, #tpu.memory_space<vmem>>, vector<16x128xf32>
    %cst_3 = arith.constant 0.000000e+00 : f32
    %10 = vector.broadcast %cst_3 : f32 to vector<16x128xf32>
    %11 = arith.cmpf one, %9, %10 : vector<16x128xf32>
    %12 = arith.subf %5, %7 : vector<16x128xf32>
    %cst_4 = arith.constant 0.000000e+00 : f32
    %13 = vector.broadcast %cst_4 : f32 to vector<16x128xf32>
    %14 = arith.select %11, %12, %13 : vector<16x128xi1>, vector<16x128xf32>
    %15 = arith.extui %11 : vector<16x128xi1> to vector<16x128xi32>
    %16 = arith.sitofp %15 : vector<16x128xi32> to vector<16x128xf32>
    %17 = arith.mulf %14, %14 : vector<16x128xf32>
    %18 = vector.shape_cast %16 : vector<16x128xf32> to vector<2x8x128xf32>
    %cst_5 = arith.constant dense<0.000000e+00> : vector<8x128xf32>
    %19 = vector.multi_reduction <add>, %18, %cst_5 [0] : vector<2x8x128xf32> to vector<8x128xf32>
    %20 = arith.addf %0, %19 : vector<8x128xf32>
    %21 = vector.shape_cast %17 : vector<16x128xf32> to vector<2x8x128xf32>
    %cst_6 = arith.constant dense<0.000000e+00> : vector<8x128xf32>
    %22 = vector.multi_reduction <add>, %21, %cst_6 [0] : vector<2x8x128xf32> to vector<8x128xf32>
    %23 = arith.addf %1, %22 : vector<8x128xf32>
    %c1_i32 = arith.constant 1 : i32
    %c0_7 = arith.constant 0 : index
    %c0_8 = arith.constant 0 : index
    %c0_9 = arith.constant 0 : index
    %c0_10 = arith.constant 0 : index
    %24 = vector.load %arg4[%c0_7, %c0_8, %c0_9, %c0_10] : memref<1x2x8x128xf32, #tpu.memory_space<vmem>>, vector<1x1x8x128xf32>
    %25 = vector.shape_cast %24 : vector<1x1x8x128xf32> to vector<8x128xf32>
    %26 = vector.shape_cast %20 : vector<8x128xf32> to vector<1x1x8x128xf32>
    tpu.vector_store %arg4[%c0_7, %c0_8, %c0_9, %c0_10], %26 {strides = array<i32>} : memref<1x2x8x128xf32, #tpu.memory_space<vmem>>, vector<1x1x8x128xf32>,
    %c0_11 = arith.constant 0 : index
    %c1 = arith.constant 1 : index
    %c0_12 = arith.constant 0 : index
    %c0_13 = arith.constant 0 : index
    %27 = vector.load %arg4[%c0_11, %c1, %c0_12, %c0_13] : memref<1x2x8x128xf32, #tpu.memory_space<vmem>>, vector<1x1x8x128xf32>
    %28 = vector.shape_cast %27 : vector<1x1x8x128xf32> to vector<8x128xf32>
    %29 = vector.shape_cast %23 : vector<8x128xf32> to vector<1x1x8x128xf32>
    tpu.vector_store %arg4[%c0_11, %c1, %c0_12, %c0_13], %29 {strides = array<i32>} : memref<1x2x8x128xf32, #tpu.memory_space<vmem>>, vector<1x1x8x128xf32>,
    return
  }
  func.func @transform_0(%arg0: i32) -> (i32, i32) {
    %c0_i32 = arith.constant 0 : i32
    %c0_i32_0 = arith.constant 0 : i32
    return %arg0, %c0_i32 : i32, i32
  }
  func.func @transform_1(%arg0: i32) -> (i32, i32) {
    %c0_i32 = arith.constant 0 : i32
    %c0_i32_0 = arith.constant 0 : i32
    return %arg0, %c0_i32 : i32, i32
  }
  func.func @transform_2(%arg0: i32) -> (i32, i32) {
    %c0_i32 = arith.constant 0 : i32
    %c0_i32_0 = arith.constant 0 : i32
    return %arg0, %c0_i32 : i32, i32
  }
  func.func @transform_3(%arg0: i32) -> (i32, i32, i32, i32) {
    %c0_i32 = arith.constant 0 : i32
    %c0_i32_0 = arith.constant 0 : i32
    %c0_i32_1 = arith.constant 0 : i32
    %c0_i32_2 = arith.constant 0 : i32
    return %arg0, %c0_i32, %c0_i32_0, %c0_i32_1 : i32, i32, i32, i32
  }
}

</mosaic_0001>

<bundles_post_ra>
// kernel: opt_resp_loss.1
= control target key start
LH: loop header
LB: loop body
LE: loop exit
PB: predicated region body
PF: predicated region fallthrough
CT: control target
= control target key end

     0   :  { %v47_v6 = vmov 0.0   ;;  %s92_s2 = inlined_call_operand.vmem [shape: f32[16,128], index: 2, kind: input, shape index: {}]   ;;  %s93_s0 = inlined_call_operand.vmem [shape: f32[16,128], index: 0, kind: input, shape index: {}]   ;;  %s94_s1 = inlined_call_operand.vmem [shape: f32[16,128], index: 1, kind: input, shape index: {}]   ;;  %s95_s3 = inlined_call_operand.vmem [shape: f32[1,2,8,128], index: 3, kind: output, shape index: {}]  }
   0x1   :  { %v18_v0 = vld [vmem:[%s92_s2] sm:$0xff]  ;;  %v19_v1 = vld [vmem:[%s92_s2 + $0x8] sm:$0xff] }
   0x2   :  { %v14_v2 = vld [vmem:[%s93_s0] sm:$0xff]  ;;  %vm20_vm0 = vcmp.ne.f32.partialorder %v18_v0, 0.0  ;;  %vm21_vm1 = vcmp.ne.f32.partialorder %v19_v1, 0.0  ;;  %v15_v3 = vld [vmem:[%s93_s0 + $0x8] sm:$0xff] }
   0x3   :  { %v16_v4 = vld [vmem:[%s94_s1] sm:$0xff]  ;;  %v17_v5 = vld [vmem:[%s94_s1 + $0x8] sm:$0xff]  ;;  %v43_v7 = vsel %vm20_vm0, 1.0, %v47_v6  ;;  %v44_v8 = vsel %vm21_vm1, 1.0, %v47_v6 }
   0x4   :  { %v22_v9 = vsub.f32 %v14_v2, %v16_v4  ;;  %v23_v10 = vsub.f32 %v15_v3, %v17_v5  ;;  %v32_v11 = vadd.f32 %v44_v8, %v43_v7 }
   0x6   :  { %v24_v12 = vsel %vm20_vm0, %v22_v9, 0.0  ;;  %v25_v13 = vsel %vm21_vm1, %v23_v10, 0.0  ;;  %36 = vst [vmem:[%s95_s3] sm:$0xff] %v32_v11 }
   0x7   :  { %v30_v14 = vmul.f32 %v24_v12, %v24_v12  ;;  %v31_v15 = vmul.f32 %v25_v13, %v25_v13 }
   0x9   :  { %v34_v16 = vadd.f32 %v31_v15, %v30_v14 }
   0xb   :  { %45 = vst [vmem:[%s95_s3 + $0x8] sm:$0xff] %v34_v16 }

</bundles_post_ra>
